<compile_context>
chip_gen: v6e
topology: v6e:2x2x1
jax: 0.10.0
libtpu: 0.0.40
codegen_flags: <defaults>
</compile_context>

<pallas_src>
import jax
import jax.numpy as jnp
from jax.experimental import pallas as pl
from jax.experimental.pallas import tpu as pltpu

N_INPUT = 784
N_INPUT_PAD = 896      # 7 * 128: lane-aligned K for the first matmul
N_H1 = 128
N_H2 = 128
N_H3 = 64
N_OUTPUT = 10


def _round_up(x, m):
    return (x + m - 1) // m * m


def _mlp_kernel(x_ref, w1_ref, b1_ref, w2_ref, b2_ref, w3_ref, b3_ref,
                w4_ref, b4_ref, o_ref):
    # x_ref: (TB, 896) bf16 tile; weights bf16 (VMEM-resident), biases f32.
    # All matmuls accumulate in f32 on the MXU; elementwise work stays f32.
    x = x_ref[...]

    h1 = jnp.dot(x, w1_ref[...], preferred_element_type=jnp.float32) + b1_ref[...]
    h1 = jnp.maximum(h1, 0.0).astype(jnp.bfloat16)

    h2 = jnp.dot(h1, w2_ref[...], preferred_element_type=jnp.float32) + b2_ref[...]
    h2 = jnp.maximum(h2, 0.0).astype(jnp.bfloat16)

    h3 = jnp.dot(h2, w3_ref[...], preferred_element_type=jnp.float32) + b3_ref[...]
    h3 = jnp.maximum(h3, 0.0).astype(jnp.bfloat16)

    logits = jnp.dot(h3, w4_ref[...], preferred_element_type=jnp.float32) + b4_ref[...]

    # log_softmax along dim=1 (numerically stable). exp/log go to the EUP slot,
    # which has slack while DMA/MXU are the binding units -> no restructuring needed.
    m = jnp.max(logits, axis=-1, keepdims=True)
    shifted = logits - m
    lse = jnp.log(jnp.sum(jnp.exp(shifted), axis=-1, keepdims=True))
    o_ref[...] = shifted - lse


def classifier_forward(x, params, *, tb=512):
    """x: (B, 1, 28, 28) (or anything flattening to (B, 784)). Returns (B, 10) f32 log-probs."""
    b = x.shape[0]
    x2d = x.reshape(b, -1).astype(jnp.float32)
    assert x2d.shape[1] == N_INPUT

    (w1, b1, w2, b2, w3, b3, w4, b4) = params

    # Pad K of the first matmul to a multiple of 128 and cast streamed operands to bf16.
    x2d = jnp.pad(x2d, ((0, 0), (0, N_INPUT_PAD - N_INPUT))).astype(jnp.bfloat16)
    w1p = jnp.pad(w1, ((0, N_INPUT_PAD - N_INPUT), (0, 0))).astype(jnp.bfloat16)
    w2b = w2.astype(jnp.bfloat16)
    w3b = w3.astype(jnp.bfloat16)
    w4b = w4.astype(jnp.bfloat16)
    b1f, b2f, b3f, b4f = (t.astype(jnp.float32) for t in (b1, b2, b3, b4))

    # Batch tile: multiple of 8 sublanes; 512 fills the 256-wide MXU (v6e/v7x) via M
    # and fits comfortably in v5e's 16 MiB scoped VMEM with double buffering.
    tb_eff = min(tb, _round_up(b, 8))
    b_pad = _round_up(b, tb_eff)
    if b_pad != b:
        x2d = jnp.pad(x2d, ((0, b_pad - b), (0, 0)))
    grid = (b_pad // tb_eff,)

    def resident(shape):
        # Constant block index -> Pallas skips re-DMA; weights stay in VMEM across steps.
        return pl.BlockSpec(shape, lambda i: tuple(0 for _ in shape))

    flops = 2 * b_pad * (N_INPUT_PAD * N_H1 + N_H1 * N_H2 + N_H2 * N_H3 + N_H3 * N_OUTPUT)
    bytes_accessed = (
        x2d.size * 2
        + (w1p.size + w2b.size + w3b.size + w4b.size) * 2
        + (b1f.size + b2f.size + b3f.size + b4f.size) * 4
        + b_pad * N_OUTPUT * 4)

    out = pl.pallas_call(
        _mlp_kernel,
        out_shape=jax.ShapeDtypeStruct((b_pad, N_OUTPUT), jnp.float32),
        grid=grid,
        in_specs=[
            pl.BlockSpec((tb_eff, N_INPUT_PAD), lambda i: (i, 0)),
            resident(w1p.shape), resident(b1f.shape),
            resident(w2b.shape), resident(b2f.shape),
            resident(w3b.shape), resident(b3f.shape),
            resident(w4b.shape), resident(b4f.shape),
        ],
        out_specs=pl.BlockSpec((tb_eff, N_OUTPUT), lambda i: (i, 0)),
        compiler_params=pltpu.CompilerParams(
            dimension_semantics=("parallel",)),
        cost_estimate=pl.CostEstimate(
            flops=flops,
            transcendentals=2 * b_pad * N_OUTPUT,
            bytes_accessed=bytes_accessed),
    )(x2d, w1p, b1f, w2b, b2f, w3b, b3f, w4b, b4f)
    return out[:b]


def init_params(key):
    """Deterministic init mirroring nn.Linear shapes; weights stored transposed (in, out), f32."""
    ks = jax.random.split(key, 8)

    def linear(kw, kb, fan_in, fan_out):
        bound = 1.0 / jnp.sqrt(fan_in)
        w_t = jax.random.uniform(kw, (fan_in, fan_out), jnp.float32, -bound, bound)
        bias = jax.random.uniform(kb, (1, fan_out), jnp.float32, -bound, bound)
        return w_t, bias

    w1, b1 = linear(ks[0], ks[1], N_INPUT, N_H1)
    w2, b2 = linear(ks[2], ks[3], N_H1, N_H2)
    w3, b3 = linear(ks[4], ks[5], N_H2, N_H3)
    w4, b4 = linear(ks[6], ks[7], N_H3, N_OUTPUT)
    return (w1, b1, w2, b2, w3, b3, w4, b4)


def _reference_forward(x, params):
    (w1, b1, w2, b2, w3, b3, w4, b4) = params
    h = x.reshape(x.shape[0], -1).astype(jnp.float32)
    h = jnp.maximum(h @ w1 + b1, 0.0)
    h = jnp.maximum(h @ w2 + b2, 0.0)
    h = jnp.maximum(h @ w3 + b3, 0.0)
    logits = h @ w4 + b4
    return jax.nn.log_softmax(logits, axis=1)


if __name__ == "__main__":
    key = jax.random.PRNGKey(0)
    k_params, k_x, k_x2 = jax.random.split(key, 3)
    params = init_params(k_params)

    # Small MNIST-shaped batch (B, 1, 28, 28) -> flattens to 784.
    x = jax.random.normal(k_x, (2, 1, 28, 28), dtype=jnp.float32)
    out = jax.block_until_ready(classifier_forward(x, params))
    ref = _reference_forward(x, params)
    assert out.shape == (2, N_OUTPUT)
    # bf16 inputs/weights vs f32 reference -> relaxed tolerance.
    assert jnp.allclose(out, ref, atol=1e-1, rtol=1e-1), "mismatch vs reference (small batch)"
    # log-probs must exponentiate to a distribution.
    assert jnp.allclose(jnp.exp(out).sum(-1), 1.0, atol=1e-3), "log_softmax not normalized"

    # Exercise the multi-tile / padded-batch path (B not a multiple of TB).
    x_big = jax.random.normal(k_x2, (1037, 1, 28, 28), dtype=jnp.float32)
    out_big = jax.block_until_ready(classifier_forward(x_big, params))
    ref_big = _reference_forward(x_big, params)
    assert out_big.shape == (1037, N_OUTPUT)
    assert jnp.allclose(out_big, ref_big, atol=1e-1, rtol=1e-1), "mismatch vs reference (tiled batch)"
    assert jnp.allclose(jnp.exp(out_big).sum(-1), 1.0, atol=1e-3), "log_softmax not normalized (tiled)"

    print("KERNEL_OK")
</pallas_src>

<mosaic_0001>
module attributes {stable_mosaic.version = 11 : i64} {
  func.func @_mlp_kernel(%arg0: i32, %arg1: memref<8x896xbf16, #tpu.memory_space<vmem>>, %arg2: memref<896x128xbf16, #tpu.memory_space<vmem>>, %arg3: memref<1x128xf32, #tpu.memory_space<vmem>>, %arg4: memref<128x128xbf16, #tpu.memory_space<vmem>>, %arg5: memref<1x128xf32, #tpu.memory_space<vmem>>, %arg6: memref<128x64xbf16, #tpu.memory_space<vmem>>, %arg7: memref<1x64xf32, #tpu.memory_space<vmem>>, %arg8: memref<64x10xbf16, #tpu.memory_space<vmem>>, %arg9: memref<1x10xf32, #tpu.memory_space<vmem>>, %arg10: memref<8x10xf32, #tpu.memory_space<vmem>>) attributes {dimension_semantics = [#tpu.dimension_semantics<parallel>], iteration_bounds = array<i64: 1>, scalar_prefetch = 0 : i64, scratch_operands = 0 : i64, tpu.core_type = #tpu.core_type<tc>, window_params = [{transform_indices = @transform_0, window_bounds = array<i64: 8, 896>}, {pipeline_mode = #tpu.pipeline_mode<synchronous>, transform_indices = @transform_1, window_bounds = array<i64: 896, 128>}, {pipeline_mode = #tpu.pipeline_mode<synchronous>, transform_indices = @transform_2, window_bounds = array<i64: 1, 128>}, {pipeline_mode = #tpu.pipeline_mode<synchronous>, transform_indices = @transform_3, window_bounds = array<i64: 128, 128>}, {pipeline_mode = #tpu.pipeline_mode<synchronous>, transform_indices = @transform_4, window_bounds = array<i64: 1, 128>}, {pipeline_mode = #tpu.pipeline_mode<synchronous>, transform_indices = @transform_5, window_bounds = array<i64: 128, 64>}, {pipeline_mode = #tpu.pipeline_mode<synchronous>, transform_indices = @transform_6, window_bounds = array<i64: 1, 64>}, {pipeline_mode = #tpu.pipeline_mode<synchronous>, transform_indices = @transform_7, window_bounds = array<i64: 64, 10>}, {pipeline_mode = #tpu.pipeline_mode<synchronous>, transform_indices = @transform_8, window_bounds = array<i64: 1, 10>}, {transform_indices = @transform_9, window_bounds = array<i64: 8, 10>}]} {
    %c0 = arith.constant 0 : index
    %c0_0 = arith.constant 0 : index
    %0 = vector.load %arg1[%c0, %c0_0] : memref<8x896xbf16, #tpu.memory_space<vmem>>, vector<8x896xbf16>
    %c0_1 = arith.constant 0 : index
    %c0_2 = arith.constant 0 : index
    %1 = vector.load %arg2[%c0_1, %c0_2] : memref<896x128xbf16, #tpu.memory_space<vmem>>, vector<896x128xbf16>
    %cst = arith.constant dense<0.000000e+00> : vector<8x128xf32>
    %2 = tpu.matmul %0, %1, %cst {dimension_numbers = #tpu.dot_dimension_numbers<[1], [0], [0], [1], [0, 0, 1, 1], [], []>} : vector<8x896xbf16>, vector<896x128xbf16>, vector<8x128xf32> -> vector<8x128xf32>
    %c0_3 = arith.constant 0 : index
    %c0_4 = arith.constant 0 : index
    %3 = vector.load %arg3[%c0_3, %c0_4] : memref<1x128xf32, #tpu.memory_space<vmem>>, vector<1x128xf32>
    %4 = vector.broadcast %3 : vector<1x128xf32> to vector<8x128xf32>
    %5 = arith.addf %2, %4 : vector<8x128xf32>
    %cst_5 = arith.constant 0.000000e+00 : f32
    %6 = vector.broadcast %cst_5 : f32 to vector<8x128xf32>
    %7 = arith.maximumf %5, %6 : vector<8x128xf32>
    %8 = arith.truncf %7 : vector<8x128xf32> to vector<8x128xbf16>
    %c0_6 = arith.constant 0 : index
    %c0_7 = arith.constant 0 : index
    %9 = vector.load %arg4[%c0_6, %c0_7] : memref<128x128xbf16, #tpu.memory_space<vmem>>, vector<128x128xbf16>
    %cst_8 = arith.constant dense<0.000000e+00> : vector<8x128xf32>
    %10 = tpu.matmul %8, %9, %cst_8 {dimension_numbers = #tpu.dot_dimension_numbers<[1], [0], [0], [1], [0, 0, 1, 1], [], []>} : vector<8x128xbf16>, vector<128x128xbf16>, vector<8x128xf32> -> vector<8x128xf32>
    %c0_9 = arith.constant 0 : index
    %c0_10 = arith.constant 0 : index
    %11 = vector.load %arg5[%c0_9, %c0_10] : memref<1x128xf32, #tpu.memory_space<vmem>>, vector<1x128xf32>
    %12 = vector.broadcast %11 : vector<1x128xf32> to vector<8x128xf32>
    %13 = arith.addf %10, %12 : vector<8x128xf32>
    %cst_11 = arith.constant 0.000000e+00 : f32
    %14 = vector.broadcast %cst_11 : f32 to vector<8x128xf32>
    %15 = arith.maximumf %13, %14 : vector<8x128xf32>
    %16 = arith.truncf %15 : vector<8x128xf32> to vector<8x128xbf16>
    %c0_12 = arith.constant 0 : index
    %c0_13 = arith.constant 0 : index
    %17 = vector.load %arg6[%c0_12, %c0_13] : memref<128x64xbf16, #tpu.memory_space<vmem>>, vector<128x64xbf16>
    %cst_14 = arith.constant dense<0.000000e+00> : vector<8x64xf32>
    %18 = tpu.matmul %16, %17, %cst_14 {dimension_numbers = #tpu.dot_dimension_numbers<[1], [0], [0], [1], [0, 0, 1, 1], [], []>} : vector<8x128xbf16>, vector<128x64xbf16>, vector<8x64xf32> -> vector<8x64xf32>
    %c0_15 = arith.constant 0 : index
    %c0_16 = arith.constant 0 : index
    %19 = vector.load %arg7[%c0_15, %c0_16] : memref<1x64xf32, #tpu.memory_space<vmem>>, vector<1x64xf32>
    %20 = vector.broadcast %19 : vector<1x64xf32> to vector<8x64xf32>
    %21 = arith.addf %18, %20 : vector<8x64xf32>
    %cst_17 = arith.constant 0.000000e+00 : f32
    %22 = vector.broadcast %cst_17 : f32 to vector<8x64xf32>
    %23 = arith.maximumf %21, %22 : vector<8x64xf32>
    %24 = arith.truncf %23 : vector<8x64xf32> to vector<8x64xbf16>
    %c0_18 = arith.constant 0 : index
    %c0_19 = arith.constant 0 : index
    %25 = vector.load %arg8[%c0_18, %c0_19] : memref<64x10xbf16, #tpu.memory_space<vmem>>, vector<64x10xbf16>
    %cst_20 = arith.constant dense<0.000000e+00> : vector<8x10xf32>
    %26 = tpu.matmul %24, %25, %cst_20 {dimension_numbers = #tpu.dot_dimension_numbers<[1], [0], [0], [1], [0, 0, 1, 1], [], []>} : vector<8x64xbf16>, vector<64x10xbf16>, vector<8x10xf32> -> vector<8x10xf32>
    %c0_21 = arith.constant 0 : index
    %c0_22 = arith.constant 0 : index
    %27 = vector.load %arg9[%c0_21, %c0_22] : memref<1x10xf32, #tpu.memory_space<vmem>>, vector<1x10xf32>
    %28 = vector.broadcast %27 : vector<1x10xf32> to vector<8x10xf32>
    %29 = arith.addf %26, %28 : vector<8x10xf32>
    %cst_23 = arith.constant dense<0xFF800000> : vector<8xf32>
    %30 = vector.multi_reduction <maximumf>, %29, %cst_23 [1] : vector<8x10xf32> to vector<8xf32>
    %31 = vector.shape_cast %30 : vector<8xf32> to vector<8x1xf32>
    %32 = vector.broadcast %31 : vector<8x1xf32> to vector<8x10xf32>
    %33 = arith.subf %29, %32 : vector<8x10xf32>
    %34 = math.exp %33 : vector<8x10xf32>
    %cst_24 = arith.constant dense<0.000000e+00> : vector<8xf32>
    %35 = vector.multi_reduction <add>, %34, %cst_24 [1] : vector<8x10xf32> to vector<8xf32>
    %36 = vector.shape_cast %35 : vector<8xf32> to vector<8x1xf32>
    %37 = math.log %36 : vector<8x1xf32>
    %38 = vector.broadcast %37 : vector<8x1xf32> to vector<8x10xf32>
    %39 = arith.subf %33, %38 : vector<8x10xf32>
    %c0_25 = arith.constant 0 : index
    %c0_26 = arith.constant 0 : index
    %40 = vector.load %arg10[%c0_25, %c0_26] : memref<8x10xf32, #tpu.memory_space<vmem>>, vector<8x10xf32>
    tpu.vector_store %arg10[%c0_25, %c0_26], %39 {strides = array<i32>} : memref<8x10xf32, #tpu.memory_space<vmem>>, vector<8x10xf32>,
    return
  }
  func.func @transform_0(%arg0: i32) -> (i32, i32) {
    %c0_i32 = arith.constant 0 : i32
    %c0_i32_0 = arith.constant 0 : i32
    return %arg0, %c0_i32 : i32, i32
  }
  func.func @transform_1(%arg0: i32) -> (i32, i32) {
    %c0_i32 = arith.constant 0 : i32
    %c0_i32_0 = arith.constant 0 : i32
    %c0_i32_1 = arith.constant 0 : i32
    return %c0_i32, %c0_i32_0 : i32, i32
  }
  func.func @transform_2(%arg0: i32) -> (i32, i32) {
    %c0_i32 = arith.constant 0 : i32
    %c0_i32_0 = arith.constant 0 : i32
    %c0_i32_1 = arith.constant 0 : i32
    return %c0_i32, %c0_i32_0 : i32, i32
  }
  func.func @transform_3(%arg0: i32) -> (i32, i32) {
    %c0_i32 = arith.constant 0 : i32
    %c0_i32_0 = arith.constant 0 : i32
    %c0_i32_1 = arith.constant 0 : i32
    return %c0_i32, %c0_i32_0 : i32, i32
  }
  func.func @transform_4(%arg0: i32) -> (i32, i32) {
    %c0_i32 = arith.constant 0 : i32
    %c0_i32_0 = arith.constant 0 : i32
    %c0_i32_1 = arith.constant 0 : i32
    return %c0_i32, %c0_i32_0 : i32, i32
  }
  func.func @transform_5(%arg0: i32) -> (i32, i32) {
    %c0_i32 = arith.constant 0 : i32
    %c0_i32_0 = arith.constant 0 : i32
    %c0_i32_1 = arith.constant 0 : i32
    return %c0_i32, %c0_i32_0 : i32, i32
  }
  func.func @transform_6(%arg0: i32) -> (i32, i32) {
    %c0_i32 = arith.constant 0 : i32
    %c0_i32_0 = arith.constant 0 : i32
    %c0_i32_1 = arith.constant 0 : i32
    return %c0_i32, %c0_i32_0 : i32, i32
  }
  func.func @transform_7(%arg0: i32) -> (i32, i32) {
    %c0_i32 = arith.constant 0 : i32
    %c0_i32_0 = arith.constant 0 : i32
    %c0_i32_1 = arith.constant 0 : i32
    return %c0_i32, %c0_i32_0 : i32, i32
  }
  func.func @transform_8(%arg0: i32) -> (i32, i32) {
    %c0_i32 = arith.constant 0 : i32
    %c0_i32_0 = arith.constant 0 : i32
    %c0_i32_1 = arith.constant 0 : i32
    return %c0_i32, %c0_i32_0 : i32, i32
  }
  func.func @transform_9(%arg0: i32) -> (i32, i32) {
    %c0_i32 = arith.constant 0 : i32
    %c0_i32_0 = arith.constant 0 : i32
    return %arg0, %c0_i32 : i32, i32
  }
}

</mosaic_0001>

<bundles_post_ra>
// kernel: tpu_custom_call.1
= control target key start
LH: loop header
LB: loop body
LE: loop exit
PB: predicated region body
PF: predicated region fallthrough
CT: control target
= control target key end

     0   :  { %14 = vsyncpa [#allocation3], 0  ;;  %s1612_s0 = inlined_call_operand.vmem [shape: bf16[8,896], index: 0, kind: input, shape index: {}]   ;;  %s1613_s1 = inlined_call_operand.hbm [shape: bf16[896,128], index: 1, kind: input, shape index: {}]   ;;  %s1614_s2 = inlined_call_operand.vmem [shape: f32[1,128], index: 2, kind: input, shape index: {}]   ;;  %s1615_s3 = inlined_call_operand.vmem [shape: bf16[128,128], index: 3, kind: input, shape index: {}]   ;;  %s1616_s4 = inlined_call_operand.vmem [shape: f32[1,128], index: 4, kind: input, shape index: {}]   ;;  %s1617_s5 = inlined_call_operand.vmem [shape: bf16[128,64], index: 5, kind: input, shape index: {}]   ;;  %s1618_s6 = inlined_call_operand.vmem [shape: f32[1,64], index: 6, kind: input, shape index: {}]   ;;  %s1619_s7 = inlined_call_operand.vmem [shape: bf16[64,10], index: 7, kind: input, shape index: {}]   ;;  %s1620_s8 = inlined_call_operand.vmem [shape: f32[1,10], index: 8, kind: input, shape index: {}]   ;;  %s1621_s9 = inlined_call_operand.hbm [shape: f32[8,10], index: 9, kind: output, shape index: {}]  }
   0x1   :  { %15 = vsyncpa [#allocation4], 0  ;;  %s1427_s30 = smov [#allocation2]  }
   0x2   :  { %s23_s10 = sshll.u32 %s1427_s30, 4  ;;  %s24_s10 = int_to_ptr.vmem [resolvable:$true] %s23_s10 }
   0x3   :  { %s1391_s11 = scalar_lea.vmem %s24_s10, 7168  ;;  %p1396_p1 = scmp.lt.s32.totalorder %s24_s10, %s24_s10 }
   0x4   :  { %p1392_p0 = scmp.ne.s32.totalorder %s24_s10, %s1391_s11  ;;  %p1397_p2 = scmp.lt.s32.totalorder %s1391_s11, %s1391_s11 }
   0x6   :  { %p1398_p3 = por %p1397_p2, %p1396_p1 }
   0x8   :  { %p1399_p4 = pnand %p1398_p3, %p1392_p0 }
   0xa   :  { %1402 = shalt.err (!%p1399_p4)
}
   0xb   :  { %s1428_s12 = smov 64   ;;  %s1429_s13 = smov 4  }
   0xc   :  { %29 = dma.hbm_to_vmem [thread:$0]  %s1613_s1, 7168, %s24_s10, [#allocation3], %s1428_s12, %s1428_s12, %s1429_s13  }
   0xd   :  { %1423 = dma.done.wait [#allocation3], 7168  }
   0xe   :  { %1424 = vsyncadd [#allocation3], 4294960128  ;;  %v1296_v0 = vld [vmem:[#allocation2 + $0x78] sm:$0xff]   ;;  %v1300_v4 = vld [vmem:[#allocation2 + $0x70] sm:$0xff]   ;;  %v1430_v39 = vmov 0.0   ;;  %vm1431_vm0 = vmmov 0  }
   0xf   :  { %v1297_v1 = vld [vmem:[#allocation2 + $0xf8] sm:$0xff]   ;;  %1120 = vmatprep.subr.bf16.mxu0 %v1296_v0  ;;  %v1301_v5 = vld [vmem:[#allocation2 + $0xf0] sm:$0xff]   ;;  %v1304_v8 = vld [vmem:[#allocation2 + $0x68] sm:$0xff]   ;;  %vm959_vm1 = vcmask 523264   ;;  %vm1003_vm2 = vcmask 80896  }
  0x10   :  { %v1298_v2 = vld [vmem:[#allocation2 + $0x38] sm:$0xff]   ;;  %1142 = vmatprep.subr.bf16.mxu1 %v1297_v1  ;;  %v1302_v6 = vld [vmem:[#allocation2 + $0x30] sm:$0xff]   ;;  %v1305_v9 = vld [vmem:[#allocation2 + $0xe8] sm:$0xff]  }
  0x11   :  { %v1299_v3 = vld [vmem:[#allocation2 + $0xb8] sm:$0xff]   ;;  %1121 = vmatpush3.bf16.msra.mxu0 %v1298_v2  ;;  %v1303_v7 = vld [vmem:[#allocation2 + $0xb0] sm:$0xff]   ;;  %v1306_v10 = vld [vmem:[#allocation2 + $0x28] sm:$0xff]  }
  0x12   :  { %1143 = vmatpush3.bf16.msra.mxu1 %v1299_v3  ;;  %1122 = vmatprep.subr.bf16.mxu0 %v1300_v4  ;;  %v1307_v11 = vld [vmem:[#allocation2 + $0xa8] sm:$0xff]   ;;  %v1308_v12 = vld [vmem:[#allocation2 + $0x60] sm:$0xff]   ;;  %v1312_v16 = vld [vmem:[#allocation2 + $0x58] sm:$0xff]  }
  0x13   :  { %1144 = vmatprep.subr.bf16.mxu1 %v1301_v5  ;;  %v1309_v13 = vld [vmem:[#allocation2 + $0xe0] sm:$0xff]   ;;  %v1313_v17 = vld [vmem:[#allocation2 + $0xd8] sm:$0xff]   ;;  %v1316_v20 = vld [vmem:[#allocation2 + $0x50] sm:$0xff]  }
  0x14   :  { %v1310_v14 = vld [vmem:[#allocation2 + $0x20] sm:$0xff]   ;;  %v1314_v18 = vld [vmem:[#allocation2 + $0x18] sm:$0xff]   ;;  %v1317_v21 = vld [vmem:[#allocation2 + $0xd0] sm:$0xff]  }
  0x15   :  { %1123 = vmatpush3.bf16.msra.mxu0 %v1302_v6  ;;  %v1311_v15 = vld [vmem:[#allocation2 + $0xa0] sm:$0xff]   ;;  %v1315_v19 = vld [vmem:[#allocation2 + $0x98] sm:$0xff]   ;;  %v1318_v22 = vld [vmem:[#allocation2 + $0x10] sm:$0xff]  }
  0x16   :  { %1145 = vmatpush3.bf16.msra.mxu1 %v1303_v7  ;;  %1124 = vmatprep.subr.bf16.mxu0 %v1304_v8  ;;  %v1319_v23 = vld [vmem:[#allocation2 + $0x90] sm:$0xff]   ;;  %v1320_v24 = vld [vmem:[#allocation2 + $0x48] sm:$0xff]   ;;  %v1324_v28 = vld [vmem:[#allocation2 + $0x40] sm:$0xff]  }
  0x17   :  { %1146 = vmatprep.subr.bf16.mxu1 %v1305_v9  ;;  %v1321_v25 = vld [vmem:[#allocation2 + $0xc8] sm:$0xff]   ;;  %v1325_v29 = vld [vmem:[#allocation2 + $0xc0] sm:$0xff]   ;;  %v1332_v38 = vld [vmem:[#allocation2 + $0x178] sm:$0xff]  }
  0x18   :  { %v1322_v26 = vld [vmem:[#allocation2 + $0x8] sm:$0xff]   ;;  %v1326_v30 = vld [vmem:[#allocation2] sm:$0xff]   ;;  %v1333_v40 = vld [vmem:[#allocation2 + $0x138] sm:$0xff]  }
  0x19   :  { %1125 = vmatpush3.bf16.msra.mxu0 %v1306_v10  ;;  %v1323_v27 = vld [vmem:[#allocation2 + $0x88] sm:$0xff]   ;;  %v1327_v31 = vld [vmem:[#allocation2 + $0x80] sm:$0xff]   ;;  %v1334_v41 = vld [vmem:[#allocation2 + $0x1b8] sm:$0xff]  }
  0x1a   :  { %1147 = vmatpush3.bf16.msra.mxu1 %v1307_v11  ;;  %1126 = vmatprep.subr.bf16.mxu0 %v1308_v12  ;;  %v48_v32 = vld [vmem:[%s1612_s0] sm:$0xff]  ;;  %v49_v33 = vld [vmem:[%s1612_s0 + $0x8] sm:$0xff]  ;;  %v1335_v42 = vld [vmem:[#allocation2 + $0x170] sm:$0xff]  }
  0x1b   :  { %1148 = vmatprep.subr.bf16.mxu1 %v1309_v13  ;;  %v1033_v34 = vcombine.low %v48_v32, %v48_v32  ;;  %v1034_v35 = vcombine.high %v48_v32, %v48_v32  ;;  %v1035_v36 = vcombine.low %v49_v33, %v49_v33  ;;  %v1036_v37 = vcombine.high %v49_v33, %v49_v33  ;;  %v1336_v43 = vld [vmem:[#allocation2 + $0x130] sm:$0xff]   ;;  %v1338_v45 = vld [vmem:[#allocation2 + $0x168] sm:$0xff]   ;;  %v1341_v48 = vld [vmem:[#allocation2 + $0x160] sm:$0xff]  }
  0x1c   :  { %v1337_v44 = vld [vmem:[#allocation2 + $0x1b0] sm:$0xff]   ;;  %v1339_v46 = vld [vmem:[#allocation2 + $0x128] sm:$0xff]   ;;  %v1342_v49 = vld [vmem:[#allocation2 + $0x120] sm:$0xff]  }
  0x1d   :  { %1127 = vmatpush3.bf16.msra.mxu0 %v1310_v14  ;;  %564 = vmatprep.mubr.bf16.mxu0 %v1034_v35  ;;  %v1340_v47 = vld [vmem:[#allocation2 + $0x1a8] sm:$0xff]   ;;  %v1343_v50 = vld [vmem:[#allocation2 + $0x1a0] sm:$0xff]   ;;  %v1344_v51 = vld [vmem:[#allocation2 + $0x158] sm:$0xff]  }
  0x1e   :  { %1149 = vmatpush3.bf16.msra.mxu1 %v1311_v15  ;;  %1128 = vmatprep.subr.bf16.mxu0 %v1312_v16  ;;  %v1345_v52 = vld [vmem:[#allocation2 + $0x118] sm:$0xff]   ;;  %v1347_v54 = vld [vmem:[#allocation2 + $0x150] sm:$0xff]   ;;  %v1350_v57 = vld [vmem:[#allocation2 + $0x148] sm:$0xff]  }
  0x1f   :  { %1150 = vmatprep.subr.bf16.mxu1 %v1313_v17  ;;  %604 = vmatprep.mubr.bf16.mxu1 %v1036_v37  ;;  %v1346_v53 = vld [vmem:[#allocation2 + $0x198] sm:$0xff]   ;;  %v1348_v55 = vld [vmem:[#allocation2 + $0x110] sm:$0xff]   ;;  %v1351_v58 = vld [vmem:[#allocation2 + $0x108] sm:$0xff]  }
  0x20   :  { %v1349_v56 = vld [vmem:[#allocation2 + $0x190] sm:$0xff]   ;;  %v1352_v59 = vld [vmem:[#allocation2 + $0x188] sm:$0xff]   ;;  %v1353_v61 = vld [vmem:[#allocation2 + $0x140] sm:$0xff]  }
  0x21   :  { %1129 = vmatpush3.bf16.msra.mxu0 %v1314_v18  ;;  %v50_v60 = vld [vmem:[%s1612_s0 + $0x10] sm:$0xff]  ;;  %v1354_v63 = vld [vmem:[#allocation2 + $0x100] sm:$0xff]   ;;  %v1358_v1 = vld [vmem:[%s1612_s0 + $0x18] ss:$0 sps:$4 sm:$0xff]  }
  0x22   :  { %1151 = vmatpush3.bf16.msra.mxu1 %v1315_v19  ;;  %1130 = vmatprep.subr.bf16.mxu0 %v1316_v20  ;;  %v1038_v62 = vcombine.high %v50_v60, %v50_v60  ;;  %v1355_v0 = vld [vmem:[#allocation2 + $0x180] sm:$0xff]   ;;  %v1037_v2 = vcombine.low %v50_v60, %v50_v60  ;;  %v1359_v3 = vld [vmem:[%s1615_s3 + $0x38] sm:$0xff]   ;;  %v1360_v4 = vld [vmem:[%s1615_s3 + $0x30] sm:$0xff]  }
  0x23   :  { %1152 = vmatprep.subr.bf16.mxu1 %v1317_v21  ;;  %v1361_v5 = vld [vmem:[%s1615_s3 + $0x28] sm:$0xff]   ;;  %v1362_v6 = vld [vmem:[%s1615_s3 + $0x20] sm:$0xff]   ;;  %v1363_v7 = vld [vmem:[%s1615_s3 + $0x18] sm:$0xff]  }
  0x24   :  { %v1364_v8 = vld [vmem:[%s1615_s3 + $0x10] sm:$0xff]   ;;  %v1365_v9 = vld [vmem:[%s1615_s3 + $0x8] sm:$0xff]   ;;  %v1366_v10 = vld [vmem:[%s1615_s3] sm:$0xff]  }
  0x25   :  { %1131 = vmatpush3.bf16.msra.mxu0 %v1318_v22  ;;  %v1367_v11 = vld [vmem:[%s1617_s5 + $0x38] sm:$0xff]   ;;  %v1368_v12 = vld [vmem:[%s1617_s5 + $0x30] sm:$0xff]   ;;  %v1369_v13 = vld [vmem:[%s1617_s5 + $0x28] sm:$0xff]  }
  0x26   :  { %1153 = vmatpush3.bf16.msra.mxu1 %v1319_v23  ;;  %1132 = vmatprep.subr.bf16.mxu0 %v1320_v24  ;;  %v1370_v14 = vld [vmem:[%s1617_s5 + $0x20] sm:$0xff]   ;;  %v1371_v15 = vld [vmem:[%s1617_s5 + $0x18] sm:$0xff]   ;;  %v1372_v16 = vld [vmem:[%s1617_s5 + $0x10] sm:$0xff]  }
  0x27   :  { %1154 = vmatprep.subr.bf16.mxu1 %v1321_v25 }
  0x29   :  { %1133 = vmatpush3.bf16.msra.mxu0 %v1322_v26  ;;  %v1032_v26 = vld [vmem:[%s1614_s2] ss:$0 sm:$0xff] }
  0x2a   :  { %1155 = vmatpush3.bf16.msra.mxu1 %v1323_v27  ;;  %1134 = vmatprep.subr.bf16.mxu0 %v1324_v28 }
  0x2b   :  { %1156 = vmatprep.subr.bf16.mxu1 %v1325_v29 }
  0x2d   :  { %1135 = vmatpush3.bf16.msra.mxu0 %v1326_v30 }
  0x2e   :  { %1157 = vmatpush3.bf16.msra.mxu1 %v1327_v31  ;;  %1164 = vmatprep.subr.bf16.mxu0 %v1332_v38 }
  0x2f   :  { %1218 = vmatprep.subr.bf16.mxu1 %v1430_v39 }
  0x30   :  { %565 = vmatmul.mubr.bf16.vlgmr.msra.gmra.mxu0 %v1033_v34 }
  0x31   :  { %605 = vmatmul.mubr.bf16.vlgmr.msra.gmra.mxu1 %v1035_v36  ;;  %1165 = vmatpush3.bf16.msra.mxu0 %v1333_v40 }
  0x32   :  { %1219 = vmatpush3.bf16.msra.mxu1 %v1334_v41  ;;  %1166 = vmatprep.subr.bf16.mxu0 %v1335_v42 }
  0x33   :  { %1220 = vmatprep.subr.bf16.mxu1 %v1430_v39  ;;  %1234 = vmatprep.mubr.msk.bf16.mxu1 %vm1431_vm0, %v1430_v39 }
  0x34   :  { %644 = vmatprep.mubr.bf16.mxu0 %v1038_v62 }
  0x35   :  { %1167 = vmatpush3.bf16.msra.mxu0 %v1336_v43 }
  0x36   :  { %1221 = vmatpush3.bf16.msra.mxu1 %v1337_v44  ;;  %1168 = vmatprep.subr.bf16.mxu0 %v1338_v45  ;;  %v1373_v44 = vld [vmem:[%s1617_s5 + $0x8] sm:$0xff]   ;;  %v1374_v45 = vld [vmem:[%s1617_s5] sm:$0xff]  }
  0x37   :  { %1222 = vmatprep.subr.bf16.mxu1 %v1430_v39 }
  0x39   :  { %1169 = vmatpush3.bf16.msra.mxu0 %v1339_v46  ;;  %v1375_v46 = vld [vmem:[%s1619_s7 + $0x18] sm:$0xff]  }
  0x3a   :  { %1223 = vmatpush3.bf16.msra.mxu1 %v1340_v47  ;;  %1170 = vmatprep.subr.bf16.mxu0 %v1341_v48  ;;  %v1376_v47 = vld [vmem:[%s1619_s7 + $0x10] sm:$0xff]   ;;  %v1096_v48 = vld [vmem:[%s1616_s4] ss:$0 sm:$0xff] }
  0x3b   :  { %1224 = vmatprep.subr.bf16.mxu1 %v1430_v39 }
  0x3d   :  { %1171 = vmatpush3.bf16.msra.mxu0 %v1342_v49 }
  0x3e   :  { %1225 = vmatpush3.bf16.msra.mxu1 %v1343_v50  ;;  %1172 = vmatprep.subr.bf16.mxu0 %v1344_v51 }
  0x3f   :  { %1226 = vmatprep.subr.bf16.mxu1 %v1430_v39 }
  0x41   :  { %1173 = vmatpush3.bf16.msra.mxu0 %v1345_v52 }
  0x42   :  { %1227 = vmatpush3.bf16.msra.mxu1 %v1346_v53  ;;  %1174 = vmatprep.subr.bf16.mxu0 %v1347_v54 }
  0x43   :  { %1228 = vmatprep.subr.bf16.mxu1 %v1430_v39 }
  0x45   :  { %1175 = vmatpush3.bf16.msra.mxu0 %v1348_v55 }
  0x46   :  { %1229 = vmatpush3.bf16.msra.mxu1 %v1349_v56  ;;  %1176 = vmatprep.subr.bf16.mxu0 %v1350_v57  ;;  %v1377_v56 = vld [vmem:[%s1619_s7 + $0x8] sm:$0xff]   ;;  %v1378_v57 = vld [vmem:[%s1619_s7] sm:$0xff]  }
  0x47   :  { %1230 = vmatprep.subr.bf16.mxu1 %v1430_v39 }
  0x49   :  { %1177 = vmatpush3.bf16.msra.mxu0 %v1351_v58  ;;  %v1105_v58 = vld [vmem:[%s1618_s6] ss:$0 sm:$0xff]  ;;  %s1432_s6 = smov [#allocation5]  }
  0x4a   :  { %1231 = vmatpush3.bf16.msra.mxu1 %v1352_v59  ;;  %1178 = vmatprep.subr.bf16.mxu0 %v1353_v61  ;;  %s1023_s7 = sshll.u32 %s1432_s6, 4  ;;  %s1024_s7 = int_to_ptr.vmem [resolvable:$true] %s1023_s7 }
  0x4b   :  { %1232 = vmatprep.subr.bf16.mxu1 %v1430_v39  ;;  %p1408_p6 = scmp.lt.s32.totalorder %s1024_s7, %s1024_s7 }
  0x4d   :  { %1179 = vmatpush3.bf16.msra.mxu0 %v1354_v63 }
  0x4e   :  { %1233 = vmatpush3.bf16.msra.mxu1 %v1355_v0  ;;  %1238 = vmatprep.subr.bf16.mxu0 %v1430_v39 }
  0x4f   :  { %1258 = vmatprep.subr.bf16.mxu1 %v1430_v39 }
  0x50   :  { %645 = vmatmul.mubr.bf16.vlgmr.msra.gmra.mxu0 %v1037_v2 }
  0x51   :  { %1235 = vmatmul.mubr.bf16.vlgmr.msra.gmra.mxu1 %v1358_v1  ;;  %1254 = vmatprep.mubr.msk.bf16.mxu0 %vm1431_vm0, %v1430_v39 }
  0x52   :  { %1274 = vmatprep.mubr.msk.bf16.mxu1 %vm1431_vm0, %v1430_v39  ;;  %1239 = vmatpush3.bf16.msra.mxu0 %v1359_v3 }
  0x53   :  { %1240 = vmatprep.subr.bf16.mxu0 %v1430_v39  ;;  %1259 = vmatpush3.bf16.msra.mxu1 %v1367_v11 }
  0x54   :  { %1260 = vmatprep.subr.bf16.mxu1 %v1430_v39 }
  0x56   :  { %1241 = vmatpush3.bf16.msra.mxu0 %v1360_v4 }
  0x57   :  { %1242 = vmatprep.subr.bf16.mxu0 %v1430_v39  ;;  %1261 = vmatpush3.bf16.msra.mxu1 %v1368_v12 }
  0x58   :  { %1262 = vmatprep.subr.bf16.mxu1 %v1430_v39 }
  0x5a   :  { %1243 = vmatpush3.bf16.msra.mxu0 %v1361_v5 }
  0x5b   :  { %1244 = vmatprep.subr.bf16.mxu0 %v1430_v39  ;;  %1263 = vmatpush3.bf16.msra.mxu1 %v1369_v13 }
  0x5c   :  { %1264 = vmatprep.subr.bf16.mxu1 %v1430_v39 }
  0x5e   :  { %1245 = vmatpush3.bf16.msra.mxu0 %v1362_v6 }
  0x5f   :  { %1246 = vmatprep.subr.bf16.mxu0 %v1430_v39  ;;  %1265 = vmatpush3.bf16.msra.mxu1 %v1370_v14 }
  0x60   :  { %1266 = vmatprep.subr.bf16.mxu1 %v1430_v39 }
  0x62   :  { %1247 = vmatpush3.bf16.msra.mxu0 %v1363_v7 }
  0x63   :  { %1248 = vmatprep.subr.bf16.mxu0 %v1430_v39  ;;  %1267 = vmatpush3.bf16.msra.mxu1 %v1371_v15 }
  0x64   :  { %1268 = vmatprep.subr.bf16.mxu1 %v1430_v39 }
  0x66   :  { %1249 = vmatpush3.bf16.msra.mxu0 %v1364_v8 }
  0x67   :  { %1250 = vmatprep.subr.bf16.mxu0 %v1430_v39  ;;  %1269 = vmatpush3.bf16.msra.mxu1 %v1372_v16 }
  0x68   :  { %1270 = vmatprep.subr.bf16.mxu1 %v1430_v39 }
  0x6a   :  { %1251 = vmatpush3.bf16.msra.mxu0 %v1365_v9 }
  0x6b   :  { %1252 = vmatprep.subr.bf16.mxu0 %v1430_v39  ;;  %1271 = vmatpush3.bf16.msra.mxu1 %v1373_v44 }
  0x6c   :  { %1272 = vmatprep.subr.bf16.mxu1 %v1430_v39 }
  0x6e   :  { %1253 = vmatpush3.bf16.msra.mxu0 %v1366_v10 }
  0x6f   :  { %1278 = vmatprep.subr.bf16.mxu0 %v1430_v39  ;;  %1273 = vmatpush3.bf16.msra.mxu1 %v1374_v45 }
  0xf0   :  { %v1136_v17 = vpop.f32.mrf.mxu0 }
  0xf1   :  { %v1158_v18 = vpop.f32.mrf.mxu1 }
  0xf2   :  { %v1137_v19 = vpop.f32.mrf.mxu0 }
  0xf3   :  { %v1159_v20 = vpop.f32.mrf.mxu1  ;;  %v1138_v25 = vadd.f32 %v1137_v19, %v1136_v17 }
  0xf4   :  { %v1139_v21 = vpop.f32.mrf.mxu0  ;;  %v1160_v28 = vadd.f32 %v1159_v20, %v1158_v18 }
  0xf5   :  { %v1161_v22 = vpop.f32.mrf.mxu1  ;;  %v567_v27 = vadd.f32 %v1138_v25, %v1032_v26 }
  0xf6   :  { %v1140_v23 = vpop.f32.mrf.mxu0 }
  0xf7   :  { %v1162_v24 = vpop.f32.mrf.mxu1  ;;  %v607_v32 = vadd.f32 %v1160_v28, %v567_v27 }
 0x110   :  { %v1180_v29 = vpop.f32.mrf.mxu0 }
 0x111   :  { %v686_v30 = vpop.f32.mrf.mxu1 }
 0x112   :  { %v1181_v31 = vpop.f32.mrf.mxu0 }
 0x113   :  { %v1182_v33 = vadd.f32 %v1181_v31, %v1180_v29  ;;  %v1236_v34 = vpop.f32.mrf.mxu1 }
 0x114   :  { %v1183_v35 = vpop.f32.mrf.mxu0 }
 0x115   :  { %v647_v36 = vadd.f32 %v1182_v33, %v607_v32  ;;  %v689_v37 = vpop.f32.mrf.mxu1 }
 0x116   :  { %v1184_v38 = vpop.f32.mrf.mxu0 }
 0x117   :  { %v687_v40 = vadd.f32 %v686_v30, %v647_v36  ;;  %v1237_v41 = vpop.f32.mrf.mxu1 }
 0x119   :  { %v692_v42 = vmax.f32 %v687_v40, 0.0 }
 0x11b   :  { %v693_v43 = vpack.c.bf16 %v692_v42, %v692_v42 }
 0x11d   :  { %1255 = vmatmul.mubr.bf16.vlgmr.msra.gmra.mxu0 %v693_v43 }
 0x11e   :  { %1286 = vmatprep.mubr.msk.bf16.mxu0 %vm1431_vm0, %v1430_v39  ;;  %1279 = vmatpush3.bf16.msra.mxu0 %v1375_v46 }
 0x11f   :  { %1280 = vmatprep.subr.bf16.mxu0 %v1430_v39 }
 0x122   :  { %1281 = vmatpush3.bf16.msra.mxu0 %v1376_v47 }
 0x123   :  { %1282 = vmatprep.subr.bf16.mxu0 %v1430_v39 }
 0x126   :  { %1283 = vmatpush3.bf16.msra.mxu0 %v1377_v56 }
 0x127   :  { %1284 = vmatprep.subr.bf16.mxu0 %v1430_v39  ;;  %v1114_v39 = vld [vmem:[%s1620_s8] ss:$0 sm:$0xff]  ;;  %s1403_s8 = scalar_lea.vmem %s1024_s7, 128 }
 0x128   :  { %p1404_p5 = scmp.ne.s32.totalorder %s1024_s7, %s1403_s8  ;;  %p1409_p7 = scmp.lt.s32.totalorder %s1403_s8, %s1403_s8 }
 0x12a   :  { %1285 = vmatpush3.bf16.msra.mxu0 %v1378_v57  ;;  %p1410_p8 = por %p1409_p7, %p1408_p6 }
 0x12c   :  { %p1411_p9 = pnand %p1410_p8, %p1404_p5 }
 0x1dd   :  { %v799_v49 = vpop.f32.mrf.mxu0 }
 0x1de   :  { %v800_v50 = vadd.f32 %v1096_v48, %v799_v49 }
 0x1df   :  { %v1256_v51 = vpop.f32.mrf.mxu0 }
 0x1e0   :  { %v805_v52 = vmax.f32 %v800_v50, 0.0 }
 0x1e1   :  { %v802_v53 = vpop.f32.mrf.mxu0 }
 0x1e2   :  { %v806_v54 = vpack.c.bf16 %v805_v52, %v805_v52 }
 0x1e3   :  { %v1257_v55 = vpop.f32.mrf.mxu0 }
 0x1e4   :  { %1275 = vmatmul.mubr.bf16.vlgmr.msra.gmra.mxu1 %v806_v54 }
 0x2a4   :  { %v912_v59 = vpop.f32.mrf.mxu1 }
 0x2a5   :  { %v913_v60 = vadd.f32 %v1105_v58, %v912_v59 }
 0x2a6   :  { %v1276_v61 = vpop.f32.mrf.mxu1 }
 0x2a7   :  { %v918_v62 = vmax.f32 %v913_v60, 0.0 }
 0x2a8   :  { %v915_v63 = vpop.f32.mrf.mxu1 }
 0x2a9   :  { %v919_v0 = vpack.c.bf16 %v918_v62, %v918_v62 }
 0x2aa   :  { %v1277_v1 = vpop.f32.mrf.mxu1 }
 0x2ab   :  { %1287 = vmatmul.mubr.msk.bf16.vlgmr.msra.gmra.mxu0 %vm959_vm1, %v919_v0 }
 0x36b   :  { %v997_v2 = vpop.f32.mrf.mxu0 }
 0x36c   :  { %v998_v3 = vadd.f32 %v1114_v39, %v997_v2 }
 0x36d   :  { %v1288_v4 = vpop.f32.mrf.mxu0 }
 0x36e   :  { %v1004_v5 = vsel %vm1003_vm2, %v998_v3, -inf }
 0x36f   :  { %1005 = vmax.xlane.f32.xlu0 %v1004_v5  ;;  %v1000_v6 = vpop.f32.mrf.mxu0 }
 0x371   :  { %v1289_v7 = vpop.f32.mrf.mxu0 }
 0x3f8   :  { %v1006_v8 = vpop.xlane.xlu0 %1005 }
 0x3f9   :  { %v1007_v9 = vsub.f32 %v998_v3, %v1006_v8 }
 0x3fb   :  { %v1008_v10 = vmul.f32 1.442695, %v1007_v9 }
 0x3fd   :  { %1379 = vpow2.f32 %v1008_v10 }
 0x40a   :  { %v1380_v11 = vpop.eup %1379 }
 0x40b   :  { %v1010_v12 = vsel %vm1003_vm2, %v1380_v11, 0.0 }
 0x40c   :  { %1011 = vadd.xlane.f32.xlu0 %v1010_v12 }
 0x495   :  { %v1012_v13 = vpop.xlane.xlu0 %1011 }
 0x496   :  { %1381 = vlog2.f32 %v1012_v13 }
 0x4a3   :  { %v1382_v14 = vpop.eup %1381 }
 0x4a4   :  { %v1014_v15 = vmul.f32 0.6931472, %v1382_v14 }
 0x4a6   :  { %v1015_v16 = vsub.f32 %v1007_v9, %v1014_v15 }
 0x4a8   :  { %1016 = vst.msk [vmem:[#allocation5] sm:$0xff] %vm1003_vm2, %v1015_v16 }
 0x4a9   :  { %1414 = shalt.err (!%p1411_p9)
}
 0x4aa   :  { %1026 = dma.vmem_to_hbm [thread:$0]  %s1024_s7, 128, %s1621_s9, [#allocation4]  }
 0x4ab   :  { %1425 = dma.done.wait [#allocation4], 128  }
 0x4ac   :  { %1426 = vsyncadd [#allocation4], 4294967168 }
 0x4ad   :  { %1030 = vsyncpa [#allocation3], 1 }
 0x4ae   :  { %1031 = vsyncpa [#allocation4], 1 }

</bundles_post_ra>
